<compile_context>
chip_gen: v7x
topology: tpu7x:2x2x1
jax: 0.10.0
libtpu: 0.0.40
codegen_flags: <defaults>
</compile_context>

<pallas_src>
import functools

import jax
import jax.numpy as jnp
import numpy as np
from jax.experimental import pallas as pl
from jax.experimental.pallas import tpu as pltpu


def _round_up(x, m):
    return ((x + m - 1) // m) * m


def _conv_block_kernel(x_ref, w_ref, b_ref, o_ref, patch_ref, y_ref, *,
                       K, Wp, CW_Y, CW_P, Cin_p):
    """Single fused step for the whole batch.

    Flat lane layout: q = n*L + h*Wp + w (images concatenated along lanes);
    channels live on sublanes.

    x_ref:     (Cin_p, X_LANES)     zero/halo-padded, batch-flattened input
    w_ref:     (Cout_p, K*K*Cin_p)  conv weights, tap-major / channel-minor
    b_ref:     (Cout_p, 1)          bias
    o_ref:     (Cout_p, CW_P)       shifted-window max, lane-dense; the wrapper
                                    gathers the Ho*Wo pool-window corner lanes
    patch_ref: (K*K*Cin_p, CW_Y)    im2col scratch (built once per call)
    y_ref:     (Cout_p, CW_Y)       relu(conv + bias), flat
    """
    taps = [(kh, kw) for kh in range(K) for kw in range(K)]

    # --- im2col for the WHOLE batch: one sublane-aligned copy per tap ---------
    # Tap (kh, kw) is just a lane-offset view of the flattened padded images.
    for t, (kh, kw) in enumerate(taps):
        patch_ref[t * Cin_p:(t + 1) * Cin_p, :] = (
            x_ref[:, pl.ds(kh * Wp + kw, CW_Y)])

    # --- conv for all images = ONE fat MXU matmul, f32 accumulator ------------
    acc = jnp.dot(w_ref[...], patch_ref[...],
                  preferred_element_type=jnp.float32)          # (Cout_p, CW_Y)

    # --- bias + ReLU (also keeps never-selected garbage lanes finite) ---------
    y_ref[...] = jnp.maximum(acc + b_ref[...], 0.0)

    # --- MaxPool2d(K, K): shifted-window running max in flat lane space -------
    # After this, lane q holds the max over the KxK window anchored at
    # (h, w) = (q // Wp, q % Wp) of its image.  Only the window-corner lanes
    # q = n*L + K*i*Wp + K*j are consumed (gathered in the wrapper); lanes that
    # mix rows / images are finite garbage and simply discarded.
    pooled = y_ref[:, pl.ds(0, CW_P)]
    for (ph, pw) in taps[1:]:
        pooled = jnp.maximum(pooled, y_ref[:, pl.ds(ph * Wp + pw, CW_P)])
    o_ref[...] = pooled


def conv_block_forward(x_nchw, w_oihw, bias, kernel_size):
    """Equivalent of ConvBlock.forward: pool(relu(conv(x))). NCHW in / NCHW out."""
    N, Cin, H, W = x_nchw.shape
    Cout = w_oihw.shape[0]
    K = kernel_size
    pad = 1

    Hc, Wc = H + 2 * pad - K + 1, W + 2 * pad - K + 1   # conv output size
    Ho, Wo = Hc // K, Wc // K                           # pooled size (floor mode)
    Wp = W + 2 * pad                                    # padded row width
    Hp = H + 2 * pad + 1                                # +1 slack row for flat windows
    L = Hp * Wp                                         # flat lanes per image
    Cin_p = _round_up(Cin, 8)                           # sublane tile
    Cout_p = _round_up(Cout, 8)
    maxoff = (K - 1) * Wp + (K - 1)                     # largest flat tap offset

    # Lane extents (all rounded to the 128-lane tile for aligned loads/stores):
    #   CW_P covers every pool-window corner lane of every image,
    #   CW_Y = CW_P + pool offsets, X_LANES = CW_Y + conv offsets.
    last_corner = (N - 1) * L + K * (Ho - 1) * Wp + K * (Wo - 1)
    CW_P = _round_up(last_corner + 1, 128)
    CW_Y = _round_up(CW_P + maxoff, 128)
    X_LANES = _round_up(CW_Y + maxoff, 128)

    # Input prep (tiny wrapper-side layout plumbing): channel round-up + conv
    # halo (+1 slack row), concatenate images along lanes, pad lanes to X_LANES.
    x_p = jnp.pad(x_nchw, ((0, 0), (0, Cin_p - Cin), (pad, pad + 1), (pad, pad)))
    x_flat = jnp.transpose(x_p, (1, 0, 2, 3)).reshape(Cin_p, N * L)
    x_flat = jnp.pad(x_flat, ((0, 0), (0, X_LANES - N * L)))

    # OIHW -> (Cout_p, K*K*Cin_p); row (kh*K + kw)*Cin_p + c matches im2col rows.
    w2 = jnp.pad(jnp.transpose(w_oihw, (0, 2, 3, 1)),
                 ((0, Cout_p - Cout), (0, 0), (0, 0), (0, Cin_p - Cin))
                 ).reshape(Cout_p, K * K * Cin_p)
    b2 = jnp.pad(bias, (0, Cout_p - Cout)).reshape(Cout_p, 1)

    kernel = functools.partial(_conv_block_kernel, K=K, Wp=Wp, CW_Y=CW_Y,
                               CW_P=CW_P, Cin_p=Cin_p)

    out_flat = pl.pallas_call(
        kernel,
        out_shape=jax.ShapeDtypeStruct((Cout_p, CW_P), jnp.float32),
        grid=(1,),                                     # one fused step for the batch
        in_specs=[
            pl.BlockSpec((Cin_p, X_LANES), lambda i: (0, 0)),
            pl.BlockSpec((Cout_p, K * K * Cin_p), lambda i: (0, 0)),
            pl.BlockSpec((Cout_p, 1), lambda i: (0, 0)),
        ],
        out_specs=pl.BlockSpec((Cout_p, CW_P), lambda i: (0, 0)),
        scratch_shapes=[
            pltpu.VMEM((K * K * Cin_p, CW_Y), jnp.float32),   # im2col matrix
            pltpu.VMEM((Cout_p, CW_Y), jnp.float32),          # relu(conv + bias)
        ],
        compiler_params=pltpu.CompilerParams(
            dimension_semantics=("arbitrary",)),
    )(x_flat, w2, b2)

    # Window-corner gather + batch unpacking: cheap XLA layout ops on a tiny array.
    if CW_P >= N * L:
        full = out_flat[:, :N * L]
    else:
        full = jnp.pad(out_flat, ((0, 0), (0, N * L - CW_P)))
    grid_nhw = full.reshape(Cout_p, N, Hp, Wp)
    pooled = grid_nhw[:, :, 0:K * Ho:K, 0:K * Wo:K]           # (Cout_p, N, Ho, Wo)
    return jnp.transpose(pooled[:Cout], (1, 0, 2, 3))         # (N, Cout, Ho, Wo)


def _reference_forward(x_nchw, w_oihw, bias, kernel_size):
    """Pure-JAX reference (matches torch Conv2d(pad=1) -> relu -> MaxPool2d(k,k))."""
    y = jax.lax.conv_general_dilated(
        x_nchw, w_oihw, window_strides=(1, 1), padding=((1, 1), (1, 1)),
        dimension_numbers=("NCHW", "OIHW", "NCHW"))
    y = jnp.maximum(y + bias.reshape(1, -1, 1, 1), 0.0)
    y = jax.lax.reduce_window(
        y, -jnp.inf, jax.lax.max,
        window_dimensions=(1, 1, kernel_size, kernel_size),
        window_strides=(1, 1, kernel_size, kernel_size),
        padding="VALID")
    return y


if __name__ == "__main__":
    # ConvBlock(in_channels=4, out_channels=8, kernel_size=3), x: (2, 4, 16, 16)
    N, Cin, H, W = 2, 4, 16, 16
    Cout, K = 8, 3

    key = jax.random.PRNGKey(0)
    kx, kw, kb = jax.random.split(key, 3)
    x = jax.random.normal(kx, (N, Cin, H, W), dtype=jnp.float32)
    # Deterministic synthetic parameters (shapes from nn.Conv2d(4, 8, 3))
    w = jax.random.normal(kw, (Cout, Cin, K, K), dtype=jnp.float32) * 0.1
    b = jax.random.normal(kb, (Cout,), dtype=jnp.float32) * 0.1

    out = conv_block_forward(x, w, b, K)
    out = jax.block_until_ready(out)

    ref = jax.block_until_ready(_reference_forward(x, w, b, K))
    np.testing.assert_allclose(np.asarray(out), np.asarray(ref),
                               rtol=1e-4, atol=1e-4)

    print("KERNEL_OK")
</pallas_src>

<mosaic_0001>
module attributes {stable_mosaic.version = 11 : i64} {
  func.func @_conv_block_kernel(%arg0: i32, %arg1: memref<8x896xf32, #tpu.memory_space<vmem>>, %arg2: memref<8x72xf32, #tpu.memory_space<vmem>>, %arg3: memref<8x1xf32, #tpu.memory_space<vmem>>, %arg4: memref<8x640xf32, #tpu.memory_space<vmem>>, %arg5: memref<72x768xf32, #tpu.memory_space<vmem>>, %arg6: memref<8x768xf32, #tpu.memory_space<vmem>>) attributes {dimension_semantics = [#tpu.dimension_semantics<arbitrary>], iteration_bounds = array<i64: 1>, scalar_prefetch = 0 : i64, scratch_operands = 2 : i64, tpu.core_type = #tpu.core_type<tc>, window_params = [{pipeline_mode = #tpu.pipeline_mode<synchronous>, transform_indices = @transform_0, window_bounds = array<i64: 8, 896>}, {pipeline_mode = #tpu.pipeline_mode<synchronous>, transform_indices = @transform_1, window_bounds = array<i64: 8, 72>}, {pipeline_mode = #tpu.pipeline_mode<synchronous>, transform_indices = @transform_2, window_bounds = array<i64: 8, 1>}, {pipeline_mode = #tpu.pipeline_mode<synchronous>, transform_indices = @transform_3, window_bounds = array<i64: 8, 640>}]} {
    %c0 = arith.constant 0 : index
    %c0_0 = arith.constant 0 : index
    %0 = vector.load %arg1[%c0, %c0_0] : memref<8x896xf32, #tpu.memory_space<vmem>>, vector<8x768xf32>
    %c0_1 = arith.constant 0 : index
    %c0_2 = arith.constant 0 : index
    %1 = vector.load %arg5[%c0_1, %c0_2] : memref<72x768xf32, #tpu.memory_space<vmem>>, vector<8x768xf32>
    tpu.vector_store %arg5[%c0_1, %c0_2], %0 {strides = array<i32>} : memref<72x768xf32, #tpu.memory_space<vmem>>, vector<8x768xf32>,
    %c0_3 = arith.constant 0 : index
    %c1 = arith.constant 1 : index
    %2 = vector.load %arg1[%c0_3, %c1] : memref<8x896xf32, #tpu.memory_space<vmem>>, vector<8x768xf32>
    %c8 = arith.constant 8 : index
    %c0_4 = arith.constant 0 : index
    %3 = vector.load %arg5[%c8, %c0_4] : memref<72x768xf32, #tpu.memory_space<vmem>>, vector<8x768xf32>
    tpu.vector_store %arg5[%c8, %c0_4], %2 {strides = array<i32>} : memref<72x768xf32, #tpu.memory_space<vmem>>, vector<8x768xf32>,
    %c0_5 = arith.constant 0 : index
    %c2 = arith.constant 2 : index
    %4 = vector.load %arg1[%c0_5, %c2] : memref<8x896xf32, #tpu.memory_space<vmem>>, vector<8x768xf32>
    %c16 = arith.constant 16 : index
    %c0_6 = arith.constant 0 : index
    %5 = vector.load %arg5[%c16, %c0_6] : memref<72x768xf32, #tpu.memory_space<vmem>>, vector<8x768xf32>
    tpu.vector_store %arg5[%c16, %c0_6], %4 {strides = array<i32>} : memref<72x768xf32, #tpu.memory_space<vmem>>, vector<8x768xf32>,
    %c0_7 = arith.constant 0 : index
    %c18 = arith.constant 18 : index
    %6 = vector.load %arg1[%c0_7, %c18] : memref<8x896xf32, #tpu.memory_space<vmem>>, vector<8x768xf32>
    %c24 = arith.constant 24 : index
    %c0_8 = arith.constant 0 : index
    %7 = vector.load %arg5[%c24, %c0_8] : memref<72x768xf32, #tpu.memory_space<vmem>>, vector<8x768xf32>
    tpu.vector_store %arg5[%c24, %c0_8], %6 {strides = array<i32>} : memref<72x768xf32, #tpu.memory_space<vmem>>, vector<8x768xf32>,
    %c0_9 = arith.constant 0 : index
    %c19 = arith.constant 19 : index
    %8 = vector.load %arg1[%c0_9, %c19] : memref<8x896xf32, #tpu.memory_space<vmem>>, vector<8x768xf32>
    %c32 = arith.constant 32 : index
    %c0_10 = arith.constant 0 : index
    %9 = vector.load %arg5[%c32, %c0_10] : memref<72x768xf32, #tpu.memory_space<vmem>>, vector<8x768xf32>
    tpu.vector_store %arg5[%c32, %c0_10], %8 {strides = array<i32>} : memref<72x768xf32, #tpu.memory_space<vmem>>, vector<8x768xf32>,
    %c0_11 = arith.constant 0 : index
    %c20 = arith.constant 20 : index
    %10 = vector.load %arg1[%c0_11, %c20] : memref<8x896xf32, #tpu.memory_space<vmem>>, vector<8x768xf32>
    %c40 = arith.constant 40 : index
    %c0_12 = arith.constant 0 : index
    %11 = vector.load %arg5[%c40, %c0_12] : memref<72x768xf32, #tpu.memory_space<vmem>>, vector<8x768xf32>
    tpu.vector_store %arg5[%c40, %c0_12], %10 {strides = array<i32>} : memref<72x768xf32, #tpu.memory_space<vmem>>, vector<8x768xf32>,
    %c0_13 = arith.constant 0 : index
    %c36 = arith.constant 36 : index
    %12 = vector.load %arg1[%c0_13, %c36] : memref<8x896xf32, #tpu.memory_space<vmem>>, vector<8x768xf32>
    %c48 = arith.constant 48 : index
    %c0_14 = arith.constant 0 : index
    %13 = vector.load %arg5[%c48, %c0_14] : memref<72x768xf32, #tpu.memory_space<vmem>>, vector<8x768xf32>
    tpu.vector_store %arg5[%c48, %c0_14], %12 {strides = array<i32>} : memref<72x768xf32, #tpu.memory_space<vmem>>, vector<8x768xf32>,
    %c0_15 = arith.constant 0 : index
    %c37 = arith.constant 37 : index
    %14 = vector.load %arg1[%c0_15, %c37] : memref<8x896xf32, #tpu.memory_space<vmem>>, vector<8x768xf32>
    %c56 = arith.constant 56 : index
    %c0_16 = arith.constant 0 : index
    %15 = vector.load %arg5[%c56, %c0_16] : memref<72x768xf32, #tpu.memory_space<vmem>>, vector<8x768xf32>
    tpu.vector_store %arg5[%c56, %c0_16], %14 {strides = array<i32>} : memref<72x768xf32, #tpu.memory_space<vmem>>, vector<8x768xf32>,
    %c0_17 = arith.constant 0 : index
    %c38 = arith.constant 38 : index
    %16 = vector.load %arg1[%c0_17, %c38] : memref<8x896xf32, #tpu.memory_space<vmem>>, vector<8x768xf32>
    %c64 = arith.constant 64 : index
    %c0_18 = arith.constant 0 : index
    %17 = vector.load %arg5[%c64, %c0_18] : memref<72x768xf32, #tpu.memory_space<vmem>>, vector<8x768xf32>
    tpu.vector_store %arg5[%c64, %c0_18], %16 {strides = array<i32>} : memref<72x768xf32, #tpu.memory_space<vmem>>, vector<8x768xf32>,
    %c0_19 = arith.constant 0 : index
    %c0_20 = arith.constant 0 : index
    %18 = vector.load %arg2[%c0_19, %c0_20] : memref<8x72xf32, #tpu.memory_space<vmem>>, vector<8x72xf32>
    %c0_21 = arith.constant 0 : index
    %c0_22 = arith.constant 0 : index
    %19 = vector.load %arg5[%c0_21, %c0_22] : memref<72x768xf32, #tpu.memory_space<vmem>>, vector<72x768xf32>
    %cst = arith.constant dense<0.000000e+00> : vector<8x768xf32>
    %20 = tpu.matmul %18, %19, %cst {dimension_numbers = #tpu.dot_dimension_numbers<[1], [0], [0], [1], [0, 0, 1, 1], [], []>} : vector<8x72xf32>, vector<72x768xf32>, vector<8x768xf32> -> vector<8x768xf32>
    %c0_23 = arith.constant 0 : index
    %c0_24 = arith.constant 0 : index
    %21 = vector.load %arg3[%c0_23, %c0_24] : memref<8x1xf32, #tpu.memory_space<vmem>>, vector<8x1xf32>
    %22 = vector.broadcast %21 : vector<8x1xf32> to vector<8x768xf32>
    %23 = arith.addf %20, %22 : vector<8x768xf32>
    %cst_25 = arith.constant 0.000000e+00 : f32
    %24 = vector.broadcast %cst_25 : f32 to vector<8x768xf32>
    %25 = arith.maximumf %23, %24 : vector<8x768xf32>
    %c0_26 = arith.constant 0 : index
    %c0_27 = arith.constant 0 : index
    %26 = vector.load %arg6[%c0_26, %c0_27] : memref<8x768xf32, #tpu.memory_space<vmem>>, vector<8x768xf32>
    tpu.vector_store %arg6[%c0_26, %c0_27], %25 {strides = array<i32>} : memref<8x768xf32, #tpu.memory_space<vmem>>, vector<8x768xf32>,
    %c0_28 = arith.constant 0 : index
    %c0_29 = arith.constant 0 : index
    %27 = vector.load %arg6[%c0_28, %c0_29] : memref<8x768xf32, #tpu.memory_space<vmem>>, vector<8x640xf32>
    %c0_30 = arith.constant 0 : index
    %c1_31 = arith.constant 1 : index
    %28 = vector.load %arg6[%c0_30, %c1_31] : memref<8x768xf32, #tpu.memory_space<vmem>>, vector<8x640xf32>
    %29 = arith.maximumf %27, %28 : vector<8x640xf32>
    %c0_32 = arith.constant 0 : index
    %c2_33 = arith.constant 2 : index
    %30 = vector.load %arg6[%c0_32, %c2_33] : memref<8x768xf32, #tpu.memory_space<vmem>>, vector<8x640xf32>
    %31 = arith.maximumf %29, %30 : vector<8x640xf32>
    %c0_34 = arith.constant 0 : index
    %c18_35 = arith.constant 18 : index
    %32 = vector.load %arg6[%c0_34, %c18_35] : memref<8x768xf32, #tpu.memory_space<vmem>>, vector<8x640xf32>
    %33 = arith.maximumf %31, %32 : vector<8x640xf32>
    %c0_36 = arith.constant 0 : index
    %c19_37 = arith.constant 19 : index
    %34 = vector.load %arg6[%c0_36, %c19_37] : memref<8x768xf32, #tpu.memory_space<vmem>>, vector<8x640xf32>
    %35 = arith.maximumf %33, %34 : vector<8x640xf32>
    %c0_38 = arith.constant 0 : index
    %c20_39 = arith.constant 20 : index
    %36 = vector.load %arg6[%c0_38, %c20_39] : memref<8x768xf32, #tpu.memory_space<vmem>>, vector<8x640xf32>
    %37 = arith.maximumf %35, %36 : vector<8x640xf32>
    %c0_40 = arith.constant 0 : index
    %c36_41 = arith.constant 36 : index
    %38 = vector.load %arg6[%c0_40, %c36_41] : memref<8x768xf32, #tpu.memory_space<vmem>>, vector<8x640xf32>
    %39 = arith.maximumf %37, %38 : vector<8x640xf32>
    %c0_42 = arith.constant 0 : index
    %c37_43 = arith.constant 37 : index
    %40 = vector.load %arg6[%c0_42, %c37_43] : memref<8x768xf32, #tpu.memory_space<vmem>>, vector<8x640xf32>
    %41 = arith.maximumf %39, %40 : vector<8x640xf32>
    %c0_44 = arith.constant 0 : index
    %c38_45 = arith.constant 38 : index
    %42 = vector.load %arg6[%c0_44, %c38_45] : memref<8x768xf32, #tpu.memory_space<vmem>>, vector<8x640xf32>
    %43 = arith.maximumf %41, %42 : vector<8x640xf32>
    %c0_46 = arith.constant 0 : index
    %c0_47 = arith.constant 0 : index
    %44 = vector.load %arg4[%c0_46, %c0_47] : memref<8x640xf32, #tpu.memory_space<vmem>>, vector<8x640xf32>
    tpu.vector_store %arg4[%c0_46, %c0_47], %43 {strides = array<i32>} : memref<8x640xf32, #tpu.memory_space<vmem>>, vector<8x640xf32>,
    return
  }
  func.func @transform_0(%arg0: i32) -> (i32, i32) {
    %c0_i32 = arith.constant 0 : i32
    %c0_i32_0 = arith.constant 0 : i32
    %c0_i32_1 = arith.constant 0 : i32
    return %c0_i32, %c0_i32_0 : i32, i32
  }
  func.func @transform_1(%arg0: i32) -> (i32, i32) {
    %c0_i32 = arith.constant 0 : i32
    %c0_i32_0 = arith.constant 0 : i32
    %c0_i32_1 = arith.constant 0 : i32
    return %c0_i32, %c0_i32_0 : i32, i32
  }
  func.func @transform_2(%arg0: i32) -> (i32, i32) {
    %c0_i32 = arith.constant 0 : i32
    %c0_i32_0 = arith.constant 0 : i32
    %c0_i32_1 = arith.constant 0 : i32
    return %c0_i32, %c0_i32_0 : i32, i32
  }
  func.func @transform_3(%arg0: i32) -> (i32, i32) {
    %c0_i32 = arith.constant 0 : i32
    %c0_i32_0 = arith.constant 0 : i32
    %c0_i32_1 = arith.constant 0 : i32
    return %c0_i32, %c0_i32_0 : i32, i32
  }
}

</mosaic_0001>

<bundles_post_ra>
// kernel: tpu_custom_call.1
= control target key start
LH: loop header
LB: loop body
LE: loop exit
PB: predicated region body
PF: predicated region fallthrough
CT: control target
= control target key end

     0   :  { %8 = vsyncpa [#allocation5], 0  ;;  %s1621_s0 = inlined_call_operand.hbm [shape: f32[8,896], index: 0, kind: input, shape index: {}]   ;;  %s1622_s1 = inlined_call_operand.vmem [shape: f32[8,72], index: 1, kind: input, shape index: {}]   ;;  %s1623_s2 = inlined_call_operand.vmem [shape: f32[8,1], index: 2, kind: input, shape index: {}]   ;;  %s1624_s3 = inlined_call_operand.hbm [shape: f32[8,640], index: 3, kind: output, shape index: {}]  }
   0x1   :  { %9 = vsyncpa [#allocation6], 0  ;;  %s1176_s12 = smov [#allocation4]   ;;  %s1128_s16 = scalar_lea.hbm %s1621_s0, 896 }
   0x2   :  { %s16_s13 = sshll.u32 %s1176_s12, 4  ;;  %p1129_p0 = scmp.ne.s32.totalorder %s1621_s0, %s1128_s16  ;;  %s17_s13 = int_to_ptr.vmem [resolvable:$true] %s16_s13 }
   0x3   :  { %p1132_p1 = scmp.lt.u32.totalorder %s1128_s16, %s1621_s0 }
   0x5   :  { %p1134_p2 = pnand %p1132_p1, %p1129_p0 }
   0x7   :  { %1137 = shalt.err (!%p1134_p2)
}
   0x8   :  { %s1138_s21 = scalar_lea.vmem %s17_s13, 896  ;;  %p1143_p4 = scmp.lt.s32.totalorder %s17_s13, %s17_s13 }
   0x9   :  { %p1139_p3 = scmp.ne.s32.totalorder %s17_s13, %s1138_s21  ;;  %p1144_p5 = scmp.lt.s32.totalorder %s1138_s21, %s1138_s21 }
   0xb   :  { %p1145_p6 = por %p1144_p5, %p1143_p4 }
   0xd   :  { %p1146_p7 = pnand %p1145_p6, %p1139_p3 }
   0xf   :  { %1149 = shalt.err (!%p1146_p7)
}
  0x10   :  { %19 = dma.hbm_to_vmem [thread:$0]  %s1621_s0, 896, %s17_s13, [#allocation5]  }
  0x11   :  { %1172 = dma.done.wait [#allocation5], 896  }
  0x12   :  { %1173 = vsyncadd [#allocation5], 4294966400  ;;  %v1220_v0 = vld [vmem:[#allocation4 + $0x8] sm:$0xff]  ;;  %v1222_v1 = vld [vmem:[#allocation4 + $0x10] sm:$0xff]  ;;  %s1177_s24 = smov 126   ;;  %s1178_s25 = smov 127  }
  0x13   :  { %v1224_v2 = vld [vmem:[#allocation4] sm:$0xff]  ;;  %v1031_v3 = vpack.i.bf16 %v1222_v1, %v1220_v0  ;;  %v1228_v4 = vld [vmem:[#allocation4 + $0x18] sm:$0xff]  ;;  %s1179_s0 = smov 110   ;;  %s1180_s26 = smov 108   ;;  %v1246_v7 = vld [vmem:[#allocation4 + $0x28] sm:$0xff]  ;;  %v1184_v10 = vmov 0.0  }
  0x14   :  { %v1026_v5 = vpack.i.bf16 %v1228_v4, %v1224_v2  ;;  %s1181_s27 = smov 109   ;;  %s1182_s28 = smov 91   ;;  %v1244_v6 = vld [vmem:[#allocation4 + $0x20] sm:$0xff]  ;;  %v45_v9 = vld [vmem:[#allocation4 + $0x30] sm:$0xff]  ;;  %544 = vmatprep.mubr.f32.mxu0 %v1184_v10  ;;  %615 = vmatprep.mubr.f32.mxu1 %v1184_v10  ;;  %v1186_v13 = vmov 0   ;;  %vm67_vm0 = vcmask 1039360  }
  0x15   :  { %1032 = vrot.lane.b32.xlu1 %v1031_v3, %s1177_s24  ;;  %1022 = vrot.lane.b32.xlu0 %v1031_v3, %s1178_s25  ;;  %s1183_s29 = smov 92   ;;  %v1086_v8 = vpack.i.bf16 %v1246_v7, %v1244_v6  ;;  %s1185_s30 = smov 90   ;;  %v1116_v11 = vpack.i.bf16 %v1244_v6, %v1228_v4  ;;  %v1121_v12 = vpack.i.bf16 %v45_v9, %v1246_v7  ;;  %v470_v14 = vld [vmem:[%s1623_s2] sm:$0xff]  ;;  %vm114_vm1 = vcmask 1031168  }
  0x16   :  { %1126 = vset.pattern.permute.xlu1 %v1186_v13  ;;  %1127 = vset.pattern.permute.xlu0 %v1186_v13  ;;  %vm161_vm2 = vcmask 900096   ;;  %vm208_vm3 = vcmask 891904   ;;  %vm255_vm4 = vcmask 883712   ;;  %vm349_vm5 = vcmask 744448  }
  0x17   :  { %vm302_vm6 = vcmask 752640   ;;  %vm396_vm7 = vcmask 736256   ;;  %vm476_vm8 = vcmask 588800  }
  0x19   :  { %1037 = vrot.lane.b32.xlu1 %v1031_v3, %s1179_s0  ;;  %1027 = vrot.lane.b32.xlu0 %v1026_v5, %s1178_s25 }
  0x1d   :  { %1047 = vrot.lane.b32.xlu1 %v1026_v5, %s1179_s0  ;;  %1042 = vrot.lane.b32.xlu0 %v1026_v5, %s1177_s24 }
  0x21   :  { %1057 = vrot.lane.b32.xlu1 %v1031_v3, %s1180_s26  ;;  %1052 = vrot.lane.b32.xlu0 %v1031_v3, %s1181_s27 }
  0x25   :  { %1067 = vrot.lane.b32.xlu1 %v1026_v5, %s1180_s26  ;;  %1062 = vrot.lane.b32.xlu0 %v1026_v5, %s1181_s27 }
  0x29   :  { %1077 = vrot.lane.b32.xlu1 %v1031_v3, %s1182_s28  ;;  %1072 = vrot.lane.b32.xlu0 %v1031_v3, %s1183_s29 }
  0x2d   :  { %335 = vrot.lane.b32.xlu1 %v1224_v2, %s1182_s28  ;;  %1082 = vrot.lane.b32.xlu0 %v1026_v5, %s1183_s29 }
  0x31   :  { %65 = vrot.lane.b32.xlu1 %v45_v9, %s1178_s25  ;;  %1087 = vrot.lane.b32.xlu0 %v1086_v8, %s1178_s25 }
  0x35   :  { %386 = vrot.lane.b32.xlu1 %v1222_v1, %s1185_s30  ;;  %384 = vrot.lane.b32.xlu0 %v1220_v0, %s1185_s30 }
  0x39   :  { %1092 = vrot.lane.b32.xlu1 %v1086_v8, %s1177_s24  ;;  %382 = vrot.lane.b32.xlu0 %v1224_v2, %s1185_s30 }
  0x3d   :  { %1097 = vrot.lane.b32.xlu1 %v1086_v8, %s1179_s0  ;;  %112 = vrot.lane.b32.xlu0 %v45_v9, %s1177_s24 }
  0x41   :  { %1102 = vrot.lane.b32.xlu1 %v1086_v8, %s1181_s27  ;;  %159 = vrot.lane.b32.xlu0 %v45_v9, %s1179_s0 }
  0x45   :  { %1107 = vrot.lane.b32.xlu1 %v1086_v8, %s1180_s26  ;;  %206 = vrot.lane.b32.xlu0 %v45_v9, %s1181_s27 }
  0x49   :  { %1112 = vrot.lane.b32.xlu1 %v1086_v8, %s1183_s29  ;;  %253 = vrot.lane.b32.xlu0 %v45_v9, %s1180_s26 }
  0x4d   :  { %1117 = vrot.lane.b32.xlu1 %v1116_v11, %s1182_s28  ;;  %300 = vrot.lane.b32.xlu0 %v45_v9, %s1183_s29 }
  0x51   :  { %388 = vrot.lane.b32.xlu1 %v1228_v4, %s1185_s30  ;;  %1122 = vrot.lane.b32.xlu0 %v1121_v12, %s1182_s28 }
  0x55   :  { %392 = vrot.lane.b32.xlu1 %v1246_v7, %s1185_s30  ;;  %390 = vrot.lane.b32.xlu0 %v1244_v6, %s1185_s30 }
  0x59   :  { %394 = vrot.lane.b32.xlu0 %v45_v9, %s1185_s30  ;;  %473 = vperm.xlu1 %1126, %v470_v14  }
  0x87   :  { %v1288_v15 = vpop.permute.xlu1 %1032  ;;  %v1290_v16 = vpop.permute.xlu0 %1022 }
  0x88   :  { %v1025_v17 = vunpack.i.h.bf16 %v1290_v16  ;;  %v1024_v18 = vunpack.i.l.bf16 %v1290_v16  ;;  %v1035_v19 = vunpack.i.h.bf16 %v1288_v15  ;;  %v1034_v20 = vunpack.i.l.bf16 %v1288_v15 }
  0x8a   :  { %v69_v21 = vsel %vm67_vm0, %v1024_v18, %v1025_v17  ;;  %v116_v29 = vsel %vm114_vm1, %v1034_v20, %v1035_v19 }
  0x8b   :  { %v1299_v22 = vpop.permute.xlu1 %1037  ;;  %v1301_v23 = vpop.permute.xlu0 %1027  ;;  %v961_v24 = vpack.c.bf16 %v69_v21, %v1220_v0 }
  0x8c   :  { %v1040_v25 = vunpack.i.h.bf16 %v1299_v22  ;;  %v1039_v26 = vunpack.i.l.bf16 %v1299_v22  ;;  %v1029_v27 = vunpack.i.l.bf16 %v1301_v23  ;;  %v1030_v8 = vunpack.i.h.bf16 %v1301_v23 }
  0x8d   :  { %962 = vmatprep.subr.bf16.mxu0 %v961_v24 }
  0x8e   :  { %v68_v28 = vsel %vm67_vm0, %v1029_v27, %v1024_v18  ;;  %v163_v30 = vsel %vm161_vm2, %v1039_v26, %v1040_v25  ;;  %v70_v21 = vsel %vm67_vm0, %v1025_v17, %v1030_v8 }
  0x8f   :  { %v1314_v31 = vpop.permute.xlu1 %1047  ;;  %v1316_v32 = vpop.permute.xlu0 %1042  ;;  %v963_v33 = vpack.c.bf16 %v68_v28, %v1224_v2  ;;  %v965_v34 = vpack.c.bf16 %v163_v30, %v116_v29  ;;  %v979_v29 = vpack.c.bf16 %v70_v21, %v1222_v1 }
  0x90   :  { %v1049_v35 = vunpack.i.l.bf16 %v1314_v31  ;;  %v1044_v36 = vunpack.i.l.bf16 %v1316_v32  ;;  %v1050_v1 = vunpack.i.h.bf16 %v1314_v31 }
  0x91   :  { %964 = vmatpush1.bf16.msra.mxu0 %v963_v33 }
  0x92   :  { %966 = vmatprep.subr.bf16.mxu0 %v965_v34  ;;  %v115_v37 = vsel %vm114_vm1, %v1044_v36, %v1034_v20  ;;  %v162_v38 = vsel %vm161_vm2, %v1049_v35, %v1039_v26  ;;  %v1380_v34 = vld [vmem:[%s1622_s1] sm:$0xff]  ;;  %v1045_v36 = vunpack.i.h.bf16 %v1316_v32  ;;  %s1187_s1 = smov [#allocation7]  }
  0x93   :  { %v1323_v39 = vpop.permute.xlu1 %1057  ;;  %v1325_v40 = vpop.permute.xlu0 %1052  ;;  %v967_v41 = vpack.c.bf16 %v162_v38, %v115_v37  ;;  %s949_s7 = sshll.u32 %s1187_s1, 4  ;;  %s950_s7 = int_to_ptr.vmem [resolvable:$true] %s949_s7 }
  0x94   :  { %v1060_v42 = vunpack.i.h.bf16 %v1323_v39  ;;  %v1059_v43 = vunpack.i.l.bf16 %v1323_v39  ;;  %v1055_v44 = vunpack.i.h.bf16 %v1325_v40  ;;  %v1054_v45 = vunpack.i.l.bf16 %v1325_v40  ;;  %s1150_s8 = scalar_lea.vmem %s950_s7, 640  ;;  %p1155_p9 = scmp.lt.s32.totalorder %s950_s7, %s950_s7 }
  0x95   :  { %968 = vmatpush1.bf16.msra.mxu0 %v967_v41  ;;  %v117_v31 = vsel %vm114_vm1, %v1035_v19, %v1045_v36  ;;  %p1151_p8 = scmp.ne.s32.totalorder %s950_s7, %s1150_s8  ;;  %p1156_p10 = scmp.lt.s32.totalorder %s1150_s8, %s1150_s8 }
  0x96   :  { %v210_v46 = vsel %vm208_vm3, %v1054_v45, %v1055_v44  ;;  %v257_v47 = vsel %vm255_vm4, %v1059_v43, %v1060_v42 }
  0x97   :  { %v1337_v48 = vpop.permute.xlu1 %1067  ;;  %v1339_v49 = vpop.permute.xlu0 %1062  ;;  %v969_v50 = vpack.c.bf16 %v257_v47, %v210_v46  ;;  %p1157_p11 = por %p1156_p10, %p1155_p9 }
  0x98   :  { %v1069_v51 = vunpack.i.l.bf16 %v1337_v48  ;;  %v1064_v52 = vunpack.i.l.bf16 %v1339_v49  ;;  %v1070_v19 = vunpack.i.h.bf16 %v1337_v48  ;;  %v1065_v22 = vunpack.i.h.bf16 %v1339_v49 }
  0x99   :  { %970 = vmatprep.subr.bf16.mxu0 %v969_v50  ;;  %p1158_p12 = pnand %p1157_p11, %p1151_p8 }
  0x9a   :  { %v209_v53 = vsel %vm208_vm3, %v1064_v52, %v1054_v45  ;;  %v256_v54 = vsel %vm255_vm4, %v1069_v51, %v1059_v43  ;;  %v211_v48 = vsel %vm208_vm3, %v1055_v44, %v1065_v22  ;;  %v258_v49 = vsel %vm255_vm4, %v1060_v42, %v1070_v19 }
  0x9b   :  { %v1345_v55 = vpop.permute.xlu1 %1077  ;;  %v1347_v56 = vpop.permute.xlu0 %1072  ;;  %v971_v57 = vpack.c.bf16 %v256_v54, %v209_v53  ;;  %v987_v40 = vpack.c.bf16 %v258_v49, %v211_v48 }
  0x9c   :  { %v1080_v58 = vunpack.i.h.bf16 %v1345_v55  ;;  %v1079_v59 = vunpack.i.l.bf16 %v1345_v55  ;;  %v1075_v60 = vunpack.i.h.bf16 %v1347_v56  ;;  %v1074_v61 = vunpack.i.l.bf16 %v1347_v56 }
  0x9d   :  { %972 = vmatpush1.bf16.msra.mxu0 %v971_v57 }
  0x9e   :  { %v304_v62 = vsel %vm302_vm6, %v1074_v61, %v1075_v60  ;;  %v351_v63 = vsel %vm349_vm5, %v1079_v59, %v1080_v58 }
  0x9f   :  { %v336_v0 = vpop.permute.xlu1 %335  ;;  %v1359_v2 = vpop.permute.xlu0 %1082  ;;  %v973_v3 = vpack.c.bf16 %v351_v63, %v304_v62 }
  0xa0   :  { %v1084_v5 = vunpack.i.l.bf16 %v1359_v2  ;;  %v350_v9 = vsel %vm349_vm5, %v336_v0, %v1079_v59  ;;  %v1085_v44 = vunpack.i.h.bf16 %v1359_v2 }
  0xa1   :  { %974 = vmatprep.subr.bf16.mxu0 %v973_v3 }
  0xa2   :  { %v303_v11 = vsel %vm302_vm6, %v1084_v5, %v1074_v61 }
  0xa3   :  { %v66_v12 = vpop.permute.xlu1 %65  ;;  %v1088_v13 = vpop.permute.xlu0 %1087  ;;  %v975_v14 = vpack.c.bf16 %v350_v9, %v303_v11 }
  0xa4   :  { %v1089_v18 = vunpack.i.l.bf16 %v1088_v13  ;;  %v1090_v20 = vunpack.i.h.bf16 %v1088_v13 }
  0xa5   :  { %976 = vmatpush1.bf16.msra.mxu0 %v975_v14 }
  0xa6   :  { %v71_v24 = vsel %vm67_vm0, %v1030_v8, %v1089_v18  ;;  %v73_v30 = vsel %vm67_vm0, %v1090_v20, %v66_v12  ;;  %v72_v16 = vsel %vm67_vm0, %v1089_v18, %v1090_v20 }
  0xa7   :  { %v1369_v26 = vpop.permute.xlu1 %386  ;;  %v385_v23 = vpop.permute.xlu0 %384  ;;  %v977_v27 = vpack.c.bf16 %v71_v24, %v1228_v4  ;;  %v993_v35 = vpack.c.bf16 %v73_v30, %v1246_v7  ;;  %v995_v37 = vpack.c.bf16 %v72_v16, %v1244_v6  ;;  %v164_v6 = vsel %vm161_vm2, %v1040_v25, %v1050_v1 }
  0xa8   :  { %v398_v28 = vsel %vm396_vm7, %v385_v23, %v1369_v26  ;;  %v983_v15 = vpack.c.bf16 %v164_v6, %v117_v31  ;;  %v305_v30 = vsel %vm302_vm6, %v1075_v60, %v1085_v44 }
  0xa9   :  { %496 = vmatprep.subr.mxu0 %v398_v28  ;;  %978 = vmatprep.subr.bf16.mxu1 %v977_v27 }
  0xaa   :  { %980 = vmatpush1.bf16.msra.mxu1 %v979_v29 }
  0xab   :  { %v1093_v17 = vpop.permute.xlu1 %1092  ;;  %v383_v33 = vpop.permute.xlu0 %382 }
  0xac   :  { %v397_v4 = vsel %vm396_vm7, %v383_v33, %v385_v23  ;;  %v1094_v38 = vunpack.i.l.bf16 %v1093_v17  ;;  %v1095_v7 = vunpack.i.h.bf16 %v1093_v17 }
  0xad   :  { %497 = vmatpush1.msra.mxu0 %v397_v4 }
  0xae   :  { %958 = vmatmul.mubr.msk.f32.vlgmr.msra.gmra.mrb[0].mxu0 %vm476_vm8, %v1380_v34  ;;  %994 = vmatprep.subr.bf16.mxu0 %v993_v35  ;;  %v118_v32 = vsel %vm114_vm1, %v1045_v36, %v1094_v38  ;;  %v119_v25 = vsel %vm114_vm1, %v1094_v38, %v1095_v7 }
  0xaf   :  { %v1098_v41 = vpop.permute.xlu1 %1097  ;;  %v113_v43 = vpop.permute.xlu0 %112  ;;  %996 = vmatpush1.bf16.msra.mxu0 %v995_v37  ;;  %686 = vmatprep.mubr.f32.mxu0 %v1184_v10 }
  0xb0   :  { %v1100_v45 = vunpack.i.h.bf16 %v1098_v41  ;;  %v1099_v46 = vunpack.i.l.bf16 %v1098_v41  ;;  %v120_v53 = vsel %vm114_vm1, %v1095_v7, %v113_v43 }
  0xb2   :  { %v165_v47 = vsel %vm161_vm2, %v1050_v1, %v1099_v46  ;;  %v166_v50 = vsel %vm161_vm2, %v1099_v46, %v1100_v45 }
  0xb3   :  { %v1103_v51 = vpop.permute.xlu1 %1102  ;;  %v160_v52 = vpop.permute.xlu0 %159  ;;  %v981_v10 = vpack.c.bf16 %v165_v47, %v118_v32  ;;  %v999_v59 = vpack.c.bf16 %v166_v50, %v119_v25 }
  0xb4   :  { %v167_v54 = vsel %vm161_vm2, %v1100_v45, %v160_v52  ;;  %v1104_v61 = vunpack.i.l.bf16 %v1103_v51  ;;  %v1105_v5 = vunpack.i.h.bf16 %v1103_v51 }
  0xb5   :  { %v997_v57 = vpack.c.bf16 %v167_v54, %v120_v53  ;;  %982 = vmatprep.subr.bf16.mxu1 %v981_v10 }
  0xb6   :  { %984 = vmatpush1.bf16.msra.mxu1 %v983_v15  ;;  %v212_v8 = vsel %vm208_vm3, %v1065_v22, %v1104_v61  ;;  %v213_v39 = vsel %vm208_vm3, %v1104_v61, %v1105_v5 }
  0xb7   :  { %v1108_v62 = vpop.permute.xlu1 %1107  ;;  %v207_v63 = vpop.permute.xlu0 %206  ;;  %998 = vmatprep.subr.bf16.mxu0 %v997_v57 }
  0xb8   :  { %v1110_v0 = vunpack.i.h.bf16 %v1108_v62  ;;  %v1109_v3 = vunpack.i.l.bf16 %v1108_v62  ;;  %1000 = vmatpush1.bf16.msra.mxu0 %v999_v59  ;;  %v214_v18 = vsel %vm208_vm3, %v1105_v5, %v207_v63 }
  0xba   :  { %v259_v9 = vsel %vm255_vm4, %v1070_v19, %v1109_v3  ;;  %v260_v11 = vsel %vm255_vm4, %v1109_v3, %v1110_v0 }
  0xbb   :  { %v1113_v12 = vpop.permute.xlu1 %1112  ;;  %v254_v13 = vpop.permute.xlu0 %253  ;;  %v985_v14 = vpack.c.bf16 %v259_v9, %v212_v8  ;;  %v1003_v42 = vpack.c.bf16 %v260_v11, %v213_v39 }
  0xbc   :  { %v261_v20 = vsel %vm255_vm4, %v1110_v0, %v254_v13  ;;  %v1114_v24 = vunpack.i.l.bf16 %v1113_v12  ;;  %v1115_v16 = vunpack.i.h.bf16 %v1113_v12 }
  0xbd   :  { %v1001_v21 = vpack.c.bf16 %v261_v20, %v214_v18  ;;  %986 = vmatprep.subr.bf16.mxu1 %v985_v14 }
  0xbe   :  { %988 = vmatpush1.bf16.msra.mxu1 %v987_v40  ;;  %v306_v2 = vsel %vm302_vm6, %v1085_v44, %v1114_v24  ;;  %v307_v56 = vsel %vm302_vm6, %v1114_v24, %v1115_v16 }
  0xbf   :  { %v1118_v23 = vpop.permute.xlu1 %1117  ;;  %v301_v27 = vpop.permute.xlu0 %300  ;;  %1002 = vmatprep.subr.bf16.mxu0 %v1001_v21 }
  0xc0   :  { %v1120_v28 = vunpack.i.h.bf16 %v1118_v23  ;;  %v1119_v29 = vunpack.i.l.bf16 %v1118_v23  ;;  %1004 = vmatpush1.bf16.msra.mxu0 %v1003_v42  ;;  %v308_v60 = vsel %vm302_vm6, %v1115_v16, %v301_v27 }
  0xc2   :  { %v353_v17 = vsel %vm349_vm5, %v1119_v29, %v1120_v28  ;;  %v352_v33 = vsel %vm349_vm5, %v1080_v58, %v1119_v29 }
  0xc3   :  { %v1123_v4 = vpop.permute.xlu0 %1122  ;;  %v989_v35 = vpack.c.bf16 %v353_v17, %v306_v2  ;;  %v991_v1 = vpack.c.bf16 %v352_v33, %v305_v30  ;;  %v389_v36 = vpop.permute.xlu1 %388 }
  0xc4   :  { %v1125_v37 = vunpack.i.h.bf16 %v1123_v4  ;;  %v1124_v38 = vunpack.i.l.bf16 %v1123_v4  ;;  %v399_v7 = vsel %vm396_vm7, %v1369_v26, %v389_v36 }
  0xc5   :  { %990 = vmatprep.subr.bf16.mxu1 %v989_v35 }
  0xc6   :  { %v354_v41 = vsel %vm349_vm5, %v1120_v28, %v1124_v38  ;;  %992 = vmatpush1.bf16.msra.mxu1 %v991_v1  ;;  %v355_v43 = vsel %vm349_vm5, %v1124_v38, %v1125_v37 }
  0xc7   :  { %v1007_v45 = vpack.c.bf16 %v354_v41, %v307_v56  ;;  %v391_v55 = vpop.permute.xlu0 %390  ;;  %v1005_v46 = vpack.c.bf16 %v355_v43, %v308_v60  ;;  %v393_v31 = vpop.permute.xlu1 %392 }
  0xc8   :  { %v400_v58 = vsel %vm396_vm7, %v389_v36, %v391_v55  ;;  %v401_v47 = vsel %vm396_vm7, %v391_v55, %v393_v31 }
  0xc9   :  { %567 = vmatprep.subr.mxu1 %v400_v58  ;;  %1006 = vmatprep.subr.bf16.mxu0 %v1005_v46 }
  0xca   :  { %568 = vmatpush1.msra.mxu1 %v399_v7  ;;  %1008 = vmatpush1.bf16.msra.mxu0 %v1007_v45 }
  0xcb   :  { %v395_v6 = vpop.permute.xlu0 %394  ;;  %959 = vmatmul.mubr.msk.f32.vlgmr.msra.gmra.mrb[0].mxu1 %vm476_vm8, %v1380_v34 }
  0xcc   :  { %v402_v32 = vsel %vm396_vm7, %v393_v31, %v395_v6 }
  0xcd   :  { %638 = vmatprep.subr.mxu0 %v402_v32 }
  0xce   :  { %639 = vmatpush1.msra.mxu0 %v401_v47 }
  0xcf   :  { %960 = vmatmul.mubr.msk.f32.vlgmr.msra.gmra.mrb[2].mxu0 %vm476_vm8, %v1380_v34 }
  0xd8   :  { %v474_v50 = vpop.permute.xlu1 %473 }
 0x181   :  { %v546_v51 = vpop.f32.mrb[0].mxu0 }
 0x182   :  { %v547_v52 = vadd.f32 %v546_v51, %v474_v50  ;;  %v548_v26 = vpop.f32.mrb[1].mxu0 }
 0x183   :  { %v549_v10 = vadd.f32 %v548_v26, %v474_v50 }
 0x184   :  { %v1438_v53 = vmax.f32 %v547_v52, 0.0 }
 0x185   :  { %v1440_v54 = vmax.f32 %v549_v10, 0.0 }
 0x186   :  { %722 = vrot.lane.b32.xlu0 %v1438_v53, %s1178_s25 }
 0x187   :  { %724 = vrot.lane.b32.xlu1 %v1440_v54, %s1178_s25 }
 0x19e   :  { %v617_v15 = vpop.f32.mrb[0].mxu1 }
 0x19f   :  { %v618_v19 = vadd.f32 %v617_v15, %v474_v50  ;;  %v619_v22 = vpop.f32.mrb[1].mxu1 }
 0x1a0   :  { %v620_v25 = vadd.f32 %v619_v22, %v474_v50 }
 0x1a1   :  { %v1446_v34 = vmax.f32 %v618_v19, 0.0 }
 0x1a2   :  { %v1448_v57 = vmax.f32 %v620_v25, 0.0  ;;  %v688_v59 = vpop.f32.mrb[2].mxu0 }
 0x1a3   :  { %v690_v61 = vpop.f32.mrb[3].mxu0  ;;  %726 = vrot.lane.b32.xlu0 %v1446_v34, %s1178_s25  ;;  %v689_v62 = vadd.f32 %v688_v59, %v474_v50 }
 0x1a4   :  { %728 = vrot.lane.b32.xlu1 %v1448_v57, %s1178_s25  ;;  %v691_v63 = vadd.f32 %v690_v61, %v474_v50 }
 0x1a5   :  { %v1510_v0 = vmax.f32 %v689_v62, 0.0 }
 0x1a6   :  { %v698_v3 = vmax.f32 %v691_v63, 0.0 }
 0x1a7   :  { %749 = vrot.lane.b32.xlu0 %v1438_v53, %s1177_s24 }
 0x1a8   :  { %751 = vrot.lane.b32.xlu1 %v1440_v54, %s1177_s24 }
 0x1ab   :  { %753 = vrot.lane.b32.xlu0 %v1446_v34, %s1177_s24 }
 0x1ac   :  { %755 = vrot.lane.b32.xlu1 %v1448_v57, %s1177_s24 }
 0x1af   :  { %776 = vrot.lane.b32.xlu0 %v1438_v53, %s1179_s0 }
 0x1b0   :  { %778 = vrot.lane.b32.xlu1 %v1440_v54, %s1179_s0 }
 0x1b3   :  { %780 = vrot.lane.b32.xlu0 %v1446_v34, %s1179_s0 }
 0x1b4   :  { %782 = vrot.lane.b32.xlu1 %v1448_v57, %s1179_s0 }
 0x1b7   :  { %803 = vrot.lane.b32.xlu0 %v1438_v53, %s1181_s27 }
 0x1b8   :  { %805 = vrot.lane.b32.xlu1 %v1440_v54, %s1181_s27 }
 0x1bb   :  { %807 = vrot.lane.b32.xlu0 %v1446_v34, %s1181_s27 }
 0x1bc   :  { %809 = vrot.lane.b32.xlu1 %v1448_v57, %s1181_s27 }
 0x1bf   :  { %830 = vrot.lane.b32.xlu0 %v1438_v53, %s1180_s26 }
 0x1c0   :  { %832 = vrot.lane.b32.xlu1 %v1440_v54, %s1180_s26 }
 0x1c3   :  { %834 = vrot.lane.b32.xlu0 %v1446_v34, %s1180_s26 }
 0x1c4   :  { %836 = vrot.lane.b32.xlu1 %v1448_v57, %s1180_s26 }
 0x1c7   :  { %857 = vrot.lane.b32.xlu0 %v1438_v53, %s1183_s29 }
 0x1c8   :  { %859 = vrot.lane.b32.xlu1 %v1440_v54, %s1183_s29 }
 0x1cb   :  { %861 = vrot.lane.b32.xlu0 %v1446_v34, %s1183_s29 }
 0x1cc   :  { %863 = vrot.lane.b32.xlu1 %v1448_v57, %s1183_s29 }
 0x1cf   :  { %884 = vrot.lane.b32.xlu0 %v1438_v53, %s1182_s28 }
 0x1d0   :  { %886 = vrot.lane.b32.xlu1 %v1440_v54, %s1182_s28 }
 0x1d3   :  { %888 = vrot.lane.b32.xlu0 %v1446_v34, %s1182_s28 }
 0x1d4   :  { %890 = vrot.lane.b32.xlu1 %v1448_v57, %s1182_s28 }
 0x1d7   :  { %911 = vrot.lane.b32.xlu0 %v1438_v53, %s1185_s30 }
 0x1d8   :  { %913 = vrot.lane.b32.xlu1 %v1440_v54, %s1185_s30 }
 0x1db   :  { %915 = vrot.lane.b32.xlu0 %v1446_v34, %s1185_s30 }
 0x1dc   :  { %917 = vrot.lane.b32.xlu1 %v1448_v57, %s1185_s30 }
 0x1df   :  { %730 = vrot.lane.b32.xlu0 %v1510_v0, %s1178_s25 }
 0x1e0   :  { %732 = vrot.lane.b32.xlu1 %v698_v3, %s1178_s25 }
 0x1e3   :  { %757 = vrot.lane.b32.xlu0 %v1510_v0, %s1177_s24 }
 0x1e4   :  { %759 = vrot.lane.b32.xlu1 %v698_v3, %s1177_s24 }
 0x1e7   :  { %784 = vrot.lane.b32.xlu0 %v1510_v0, %s1179_s0 }
 0x1e8   :  { %786 = vrot.lane.b32.xlu1 %v698_v3, %s1179_s0 }
 0x1eb   :  { %811 = vrot.lane.b32.xlu0 %v1510_v0, %s1181_s27 }
 0x1ec   :  { %813 = vrot.lane.b32.xlu1 %v698_v3, %s1181_s27 }
 0x1ef   :  { %838 = vrot.lane.b32.xlu0 %v1510_v0, %s1180_s26 }
 0x1f0   :  { %840 = vrot.lane.b32.xlu1 %v698_v3, %s1180_s26 }
 0x1f3   :  { %865 = vrot.lane.b32.xlu0 %v1510_v0, %s1183_s29 }
 0x1f4   :  { %867 = vrot.lane.b32.xlu1 %v698_v3, %s1183_s29 }
 0x1f7   :  { %892 = vrot.lane.b32.xlu0 %v1510_v0, %s1182_s28 }
 0x1f8   :  { %894 = vrot.lane.b32.xlu1 %v698_v3, %s1182_s28  ;;  %v723_v5 = vpop.permute.xlu0 %722 }
 0x1f9   :  { %v725_v48 = vpop.permute.xlu1 %724 }
 0x1fa   :  { %v734_v16 = vsel %vm67_vm0, %v723_v5, %v725_v48 }
 0x1fb   :  { %919 = vrot.lane.b32.xlu0 %v1510_v0, %s1185_s30  ;;  %v744_v33 = vmax.f32 %v1438_v53, %v734_v16 }
 0x1fc   :  { %921 = vrot.lane.b32.xlu1 %v698_v3, %s1185_s30 }
 0x215   :  { %v727_v49 = vpop.permute.xlu0 %726 }
 0x216   :  { %v1536_v8 = vpop.permute.xlu1 %728  ;;  %v735_v4 = vsel %vm67_vm0, %v725_v48, %v727_v49 }
 0x217   :  { %v736_v1 = vsel %vm67_vm0, %v727_v49, %v1536_v8  ;;  %v745_v56 = vmax.f32 %v1440_v54, %v735_v4 }
 0x218   :  { %v746_v45 = vmax.f32 %v1446_v34, %v736_v1 }
 0x219   :  { %v750_v9 = vpop.permute.xlu0 %749 }
 0x21a   :  { %v752_v11 = vpop.permute.xlu1 %751 }
 0x21b   :  { %v761_v2 = vsel %vm114_vm1, %v750_v9, %v752_v11 }
 0x21c   :  { %v771_v37 = vmax.f32 %v744_v33, %v761_v2 }
 0x21d   :  { %v754_v12 = vpop.permute.xlu0 %753 }
 0x21e   :  { %v1538_v13 = vpop.permute.xlu1 %755  ;;  %v762_v38 = vsel %vm114_vm1, %v752_v11, %v754_v12 }
 0x21f   :  { %v763_v60 = vsel %vm114_vm1, %v754_v12, %v1538_v13  ;;  %v772_v7 = vmax.f32 %v745_v56, %v762_v38 }
 0x220   :  { %v773_v32 = vmax.f32 %v746_v45, %v763_v60 }
 0x221   :  { %v777_v14 = vpop.permute.xlu0 %776 }
 0x222   :  { %v779_v18 = vpop.permute.xlu1 %778 }
 0x223   :  { %v788_v36 = vsel %vm161_vm2, %v777_v14, %v779_v18 }
 0x224   :  { %v798_v55 = vmax.f32 %v771_v37, %v788_v36 }
 0x225   :  { %v781_v20 = vpop.permute.xlu0 %780 }
 0x226   :  { %v1540_v40 = vpop.permute.xlu1 %782  ;;  %v789_v46 = vsel %vm161_vm2, %v779_v18, %v781_v20 }
 0x227   :  { %v790_v31 = vsel %vm161_vm2, %v781_v20, %v1540_v40  ;;  %v799_v51 = vmax.f32 %v772_v7, %v789_v46 }
 0x228   :  { %v800_v53 = vmax.f32 %v773_v32, %v790_v31 }
 0x229   :  { %v804_v44 = vpop.permute.xlu0 %803 }
 0x22a   :  { %v806_v39 = vpop.permute.xlu1 %805 }
 0x22b   :  { %v815_v41 = vsel %vm208_vm3, %v804_v44, %v806_v39 }
 0x22c   :  { %v825_v47 = vmax.f32 %v798_v55, %v815_v41 }
 0x22d   :  { %v808_v21 = vpop.permute.xlu0 %807 }
 0x22e   :  { %v1542_v42 = vpop.permute.xlu1 %809  ;;  %v816_v50 = vsel %vm208_vm3, %v806_v39, %v808_v21 }
 0x22f   :  { %v817_v52 = vsel %vm208_vm3, %v808_v21, %v1542_v42  ;;  %v826_v22 = vmax.f32 %v799_v51, %v816_v50 }
 0x230   :  { %v827_v59 = vmax.f32 %v800_v53, %v817_v52 }
 0x231   :  { %v831_v24 = vpop.permute.xlu0 %830 }
 0x232   :  { %v833_v23 = vpop.permute.xlu1 %832 }
 0x233   :  { %v842_v6 = vsel %vm255_vm4, %v831_v24, %v833_v23 }
 0x234   :  { %v852_v54 = vmax.f32 %v825_v47, %v842_v6 }
 0x235   :  { %v835_v27 = vpop.permute.xlu0 %834 }
 0x236   :  { %v1544_v28 = vpop.permute.xlu1 %836  ;;  %v843_v15 = vsel %vm255_vm4, %v833_v23, %v835_v27 }
 0x237   :  { %v844_v25 = vsel %vm255_vm4, %v835_v27, %v1544_v28  ;;  %v853_v63 = vmax.f32 %v826_v22, %v843_v15 }
 0x238   :  { %v854_v48 = vmax.f32 %v827_v59, %v844_v25 }
 0x239   :  { %v858_v29 = vpop.permute.xlu0 %857 }
 0x23a   :  { %v860_v30 = vpop.permute.xlu1 %859 }
 0x23b   :  { %v869_v26 = vsel %vm302_vm6, %v858_v29, %v860_v30 }
 0x23c   :  { %v879_v61 = vmax.f32 %v852_v54, %v869_v26 }
 0x23d   :  { %v862_v17 = vpop.permute.xlu0 %861 }
 0x23e   :  { %v1550_v35 = vpop.permute.xlu1 %863  ;;  %v870_v62 = vsel %vm302_vm6, %v860_v30, %v862_v17 }
 0x23f   :  { %v871_v3 = vsel %vm302_vm6, %v862_v17, %v1550_v35  ;;  %v880_v12 = vmax.f32 %v853_v63, %v870_v62 }
 0x240   :  { %v881_v20 = vmax.f32 %v854_v48, %v871_v3 }
 0x241   :  { %v885_v43 = vpop.permute.xlu0 %884 }
 0x242   :  { %v887_v58 = vpop.permute.xlu1 %886 }
 0x243   :  { %v896_v34 = vsel %vm349_vm5, %v885_v43, %v887_v58 }
 0x244   :  { %v906_v49 = vmax.f32 %v879_v61, %v896_v34 }
 0x245   :  { %v889_v10 = vpop.permute.xlu0 %888 }
 0x246   :  { %v1570_v19 = vpop.permute.xlu1 %890  ;;  %v897_v9 = vsel %vm349_vm5, %v887_v58, %v889_v10 }
 0x247   :  { %v898_v14 = vsel %vm349_vm5, %v889_v10, %v1570_v19  ;;  %v907_v39 = vmax.f32 %v880_v12, %v897_v9 }
 0x248   :  { %v908_v24 = vmax.f32 %v881_v20, %v898_v14 }
 0x249   :  { %v912_v5 = vpop.permute.xlu0 %911 }
 0x24a   :  { %v914_v11 = vpop.permute.xlu1 %913 }
 0x24b   :  { %v923_v18 = vsel %vm396_vm7, %v912_v5, %v914_v11 }
 0x24c   :  { %v933_v44 = vmax.f32 %v906_v49, %v923_v18 }
 0x24d   :  { %v916_v21 = vpop.permute.xlu0 %915 }
 0x24e   :  { %938 = vst [vmem:[#allocation7] sm:$0xff] %v933_v44  ;;  %v924_v23 = vsel %vm396_vm7, %v914_v11, %v916_v21  ;;  %v918_v27 = vpop.permute.xlu1 %917 }
 0x24f   :  { %v934_v29 = vmax.f32 %v907_v39, %v924_v23  ;;  %v925_v30 = vsel %vm396_vm7, %v916_v21, %v918_v27 }
 0x250   :  { %v935_v16 = vmax.f32 %v908_v24, %v925_v30 }
 0x251   :  { %939 = vst [vmem:[#allocation7 + $0x8] sm:$0xff] %v934_v29  ;;  %v731_v2 = vpop.permute.xlu0 %730 }
 0x252   :  { %940 = vst [vmem:[#allocation7 + $0x10] sm:$0xff] %v935_v16  ;;  %v737_v17 = vsel %vm67_vm0, %v1536_v8, %v731_v2  ;;  %v733_v33 = vpop.permute.xlu1 %732 }
 0x253   :  { %v747_v4 = vmax.f32 %v1448_v57, %v737_v17  ;;  %v738_v45 = vsel %vm67_vm0, %v731_v2, %v733_v33 }
 0x254   :  { %v748_v8 = vmax.f32 %v1510_v0, %v738_v45 }
 0x255   :  { %v758_v1 = vpop.permute.xlu0 %757 }
 0x256   :  { %v764_v36 = vsel %vm114_vm1, %v1538_v13, %v758_v1  ;;  %v760_v37 = vpop.permute.xlu1 %759 }
 0x257   :  { %v774_v38 = vmax.f32 %v747_v4, %v764_v36  ;;  %v765_v55 = vsel %vm114_vm1, %v758_v1, %v760_v37 }
 0x258   :  { %v775_v13 = vmax.f32 %v748_v8, %v765_v55 }
 0x259   :  { %v785_v56 = vpop.permute.xlu0 %784 }
 0x25a   :  { %v787_v60 = vpop.permute.xlu1 %786  ;;  %v791_v57 = vsel %vm161_vm2, %v1540_v40, %v785_v56 }
 0x25b   :  { %v792_v7 = vsel %vm161_vm2, %v785_v56, %v787_v60  ;;  %v801_v6 = vmax.f32 %v774_v38, %v791_v57 }
 0x25c   :  { %v802_v50 = vmax.f32 %v775_v13, %v792_v7 }
 0x25d   :  { %v812_v41 = vpop.permute.xlu0 %811 }
 0x25e   :  { %v814_v43 = vpop.permute.xlu1 %813  ;;  %v818_v31 = vsel %vm208_vm3, %v1542_v42, %v812_v41 }
 0x25f   :  { %v819_v32 = vsel %vm208_vm3, %v812_v41, %v814_v43  ;;  %v828_v0 = vmax.f32 %v801_v6, %v818_v31 }
 0x260   :  { %v829_v40 = vmax.f32 %v802_v50, %v819_v32 }
 0x261   :  { %v839_v46 = vpop.permute.xlu0 %838 }
 0x262   :  { %v841_v58 = vpop.permute.xlu1 %840  ;;  %v845_v51 = vsel %vm255_vm4, %v1544_v28, %v839_v46 }
 0x263   :  { %v846_v26 = vsel %vm255_vm4, %v839_v46, %v841_v58  ;;  %v855_v53 = vmax.f32 %v828_v0, %v845_v51 }
 0x264   :  { %v856_v15 = vmax.f32 %v829_v40, %v846_v26 }
 0x265   :  { %v866_v47 = vpop.permute.xlu0 %865 }
 0x266   :  { %v868_v52 = vpop.permute.xlu1 %867  ;;  %v872_v10 = vsel %vm302_vm6, %v1550_v35, %v866_v47 }
 0x267   :  { %v873_v54 = vsel %vm302_vm6, %v866_v47, %v868_v52  ;;  %v882_v34 = vmax.f32 %v855_v53, %v872_v10 }
 0x268   :  { %v883_v59 = vmax.f32 %v856_v15, %v873_v54 }
 0x269   :  { %v893_v42 = vpop.permute.xlu0 %892 }
 0x26a   :  { %v899_v22 = vsel %vm349_vm5, %v1570_v19, %v893_v42  ;;  %v895_v25 = vpop.permute.xlu1 %894 }
 0x26b   :  { %v900_v28 = vsel %vm349_vm5, %v893_v42, %v895_v25  ;;  %v909_v61 = vmax.f32 %v882_v34, %v899_v22 }
 0x26c   :  { %v910_v63 = vmax.f32 %v883_v59, %v900_v28 }
 0x26d   :  { %v920_v62 = vpop.permute.xlu0 %919 }
 0x26e   :  { %v926_v35 = vsel %vm396_vm7, %v918_v27, %v920_v62  ;;  %v922_v3 = vpop.permute.xlu1 %921 }
 0x26f   :  { %v936_v5 = vmax.f32 %v909_v61, %v926_v35  ;;  %v927_v48 = vsel %vm396_vm7, %v920_v62, %v922_v3 }
 0x270   :  { %v937_v49 = vmax.f32 %v910_v63, %v927_v48 }
 0x271   :  { %941 = vst [vmem:[#allocation7 + $0x18] sm:$0xff] %v936_v5 }
 0x272   :  { %942 = vst [vmem:[#allocation7 + $0x20] sm:$0xff] %v937_v49 }
 0x273   :  { %1161 = shalt.err (!%p1158_p12)
}
 0x274   :  { %s1162_s11 = scalar_lea.hbm %s1624_s3, 640 }
 0x275   :  { %p1163_p13 = scmp.ne.s32.totalorder %s1624_s3, %s1162_s11  ;;  %p1166_p0 = scmp.lt.u32.totalorder %s1162_s11, %s1624_s3 }
 0x277   :  { %p1168_p1 = pnand %p1166_p0, %p1163_p13 }
 0x279   :  { %1171 = shalt.err (!%p1168_p1)
}
 0x27a   :  { %952 = dma.vmem_to_hbm [thread:$0]  %s950_s7, 640, %s1624_s3, [#allocation6]  }
 0x27b   :  { %1174 = dma.done.wait [#allocation6], 640  }
 0x27c   :  { %1175 = vsyncadd [#allocation6], 4294966656 }
 0x27d   :  { %956 = vsyncpa [#allocation5], 1 }
 0x27e   :  { %957 = vsyncpa [#allocation6], 1 }

</bundles_post_ra>
